<compile_context>
chip_gen: v7x
topology: tpu7x:2x2x1
jax: 0.10.0
libtpu: 0.0.40
codegen_flags: <defaults>
</compile_context>

<pallas_src>
import jax
import jax.numpy as jnp
from jax.experimental import pallas as pl
from jax.experimental.pallas import tpu as pltpu


def _cnn_kernel(emb_ref, w_ref, b_ref, out_ref):
    """One grid step processes R = BB*L flattened (batch, position) rows.

    emb_ref: [R, E]        bf16  flattened embedded tokens (row = b*L + t)
    w_ref:   [3, E, Fpad]  bf16  conv taps (tap-major)
    b_ref:   [1, Fpad]     f32   bias (lane-padded)
    out_ref: [R, Fpad]     f32
    """
    r = out_ref.shape[0]
    e0 = emb_ref[...]                                   # [R, E] bf16

    # Sublane shifts are paid exactly once per tap (XLU). Rolls are done in
    # 32-bit (universally supported rotate path) and cast back so the MXU
    # still runs native bf16; the bf16->f32->bf16 round trip is exact.
    e_f32 = e0.astype(jnp.float32)
    e1 = pltpu.roll(e_f32, shift=r - 1, axis=0).astype(e0.dtype)  # e1[i] = e0[i+1]
    e2 = pltpu.roll(e_f32, shift=r - 2, axis=0).astype(e0.dtype)  # e2[i] = e0[i+2]

    # Three shifted bf16 matmuls accumulated in f32 (same MACs as one K=3E
    # matmul; the K-concat is skipped to avoid an unaligned lane concat).
    acc = jnp.dot(e0, w_ref[0], preferred_element_type=jnp.float32)
    acc += jnp.dot(e1, w_ref[1], preferred_element_type=jnp.float32)
    acc += jnp.dot(e2, w_ref[2], preferred_element_type=jnp.float32)
    acc += b_ref[...]                                   # broadcast [1, Fpad]
    out_ref[...] = jnp.maximum(acc, 0.0).astype(out_ref.dtype)


def _pick_batch_block(B, L, row_cap=512):
    """Sentences per grid step: block rows = BB*L, 8-aligned, BB | B."""
    divisors = [d for d in range(1, B + 1) if B % d == 0]
    aligned = [d for d in divisors if (d * L) % 8 == 0]
    fitting = [d for d in aligned if d * L <= row_cap]
    if fitting:
        return max(fitting)
    if aligned:
        return min(aligned)
    return B  # single full-extent block (always legal for BlockSpec)


def cnn_forward(x, embedding_matrix, conv_w, conv_b, *, row_cap=512):
    """Forward pass of the CNN module.

    x:                 [B, L] int32 token ids
    embedding_matrix:  [V, E] float32 (row 0 == padding row)
    conv_w:            [F, 1, 3, E] float32 (PyTorch Conv2d weight layout)
    conv_b:            [F] float32
    returns:           [B, L-2, F] float32
    """
    B, L = x.shape
    V, E = embedding_matrix.shape
    F = conv_w.shape[0]
    assert L >= 3, "sequence length must be >= 3 for a [3, E] kernel"
    Lout = L - 2
    Fpad = ((F + 127) // 128) * 128

    # Embedding lookup in bf16 (halves HBM bytes for the activation path).
    # TODO(synk): gather is still an XLA op; a fully fused in-kernel DMA row
    # gather from the HBM embedding table was not implemented.
    emb_tab = embedding_matrix.astype(jnp.bfloat16)
    embedded = jnp.take(emb_tab, x.reshape(-1), axis=0)          # [B*L, E] bf16
    # nn.Dropout on embeddings is identity in eval mode -> omitted.

    # Conv weights [F, 1, 3, E] -> tap-major [3, E, Fpad] bf16, bias [1, Fpad] f32.
    w = jnp.transpose(conv_w[:, 0, :, :], (1, 2, 0))             # [3, E, F]
    w = jnp.pad(w, ((0, 0), (0, 0), (0, Fpad - F))).astype(jnp.bfloat16)
    b = jnp.pad(conv_b, (0, Fpad - F)).reshape(1, Fpad).astype(jnp.float32)

    BB = _pick_batch_block(B, L, row_cap)
    r_blk = BB * L
    grid = (B // BB,)

    out_flat = pl.pallas_call(
        _cnn_kernel,
        out_shape=jax.ShapeDtypeStruct((B * L, Fpad), jnp.float32),
        grid_spec=pltpu.PrefetchScalarGridSpec(
            num_scalar_prefetch=0,
            grid=grid,
            in_specs=[
                pl.BlockSpec((r_blk, E), lambda i: (i, 0)),      # embedded rows
                pl.BlockSpec((3, E, Fpad), lambda i: (0, 0, 0)),  # weights (resident)
                pl.BlockSpec((1, Fpad), lambda i: (0, 0)),        # bias (resident)
            ],
            out_specs=pl.BlockSpec((r_blk, Fpad), lambda i: (i, 0)),
        ),
        compiler_params=pltpu.CompilerParams(
            dimension_semantics=("parallel",)),
    )(embedded, w, b)

    # Drop per-sentence garbage rows (t = L-2, L-1 from the roll wrap) and the
    # lane padding of F, and restore the [B, L-2, F] layout.
    return out_flat.reshape(B, L, Fpad)[:, :Lout, :F]


def _reference_forward(x, embedding_matrix, conv_w, conv_b):
    """Pure-JAX reference (bf16 inputs, f32 accumulation) matching the kernel math."""
    emb = jnp.take(embedding_matrix.astype(jnp.bfloat16), x, axis=0)
    emb = emb.astype(jnp.float32)                                # [B, L, E]
    B, L, E = emb.shape
    F = conv_w.shape[0]
    Lout = L - 2
    w = jnp.transpose(conv_w[:, 0, :, :], (1, 2, 0))             # [3, E, F]
    w = w.astype(jnp.bfloat16).astype(jnp.float32)
    acc = (emb[:, 0:Lout, :] @ w[0]
           + emb[:, 1:Lout + 1, :] @ w[1]
           + emb[:, 2:Lout + 2, :] @ w[2]
           + conv_b[None, None, :])
    return jnp.maximum(acc, 0.0)


if __name__ == "__main__":
    # Small, module-consistent shapes (n_filters default = 150 to exercise
    # the 150 -> 256 lane padding path).
    B, L = 2, 8            # batch, sequence length
    V, E = 50, 32          # vocab size, embedding_dim
    F = 150                # n_filters (module default)

    key = jax.random.PRNGKey(0)
    k_emb, k_w, k_b, k_x = jax.random.split(key, 4)

    embedding_matrix = jax.random.normal(k_emb, (V, E), jnp.float32)
    embedding_matrix = embedding_matrix.at[0].set(0.0)           # padding_idx=0 row

    conv_w = 0.1 * jax.random.normal(k_w, (F, 1, 3, E), jnp.float32)
    conv_b = 0.1 * jax.random.normal(k_b, (F,), jnp.float32)

    x = jax.random.randint(k_x, (B, L), minval=0, maxval=V, dtype=jnp.int32)

    out = jax.block_until_ready(cnn_forward(x, embedding_matrix, conv_w, conv_b))
    ref = _reference_forward(x, embedding_matrix, conv_w, conv_b)

    assert out.shape == (B, L - 2, F), out.shape
    assert jnp.allclose(out, ref, atol=1e-2, rtol=1e-2), \
        float(jnp.max(jnp.abs(out - ref)))

    print("KERNEL_OK")
</pallas_src>

<mosaic_0001>
module attributes {stable_mosaic.version = 11 : i64} {
  func.func @_cnn_kernel(%arg0: i32, %arg1: memref<16x32xbf16, #tpu.memory_space<vmem>>, %arg2: memref<3x32x256xbf16, #tpu.memory_space<vmem>>, %arg3: memref<1x256xf32, #tpu.memory_space<vmem>>, %arg4: memref<16x256xf32, #tpu.memory_space<vmem>>) attributes {dimension_semantics = [#tpu.dimension_semantics<parallel>], iteration_bounds = array<i64: 1>, scalar_prefetch = 0 : i64, scratch_operands = 0 : i64, tpu.core_type = #tpu.core_type<tc>, window_params = [{transform_indices = @transform_0, window_bounds = array<i64: 16, 32>}, {pipeline_mode = #tpu.pipeline_mode<synchronous>, transform_indices = @transform_1, window_bounds = array<i64: 3, 32, 256>}, {pipeline_mode = #tpu.pipeline_mode<synchronous>, transform_indices = @transform_2, window_bounds = array<i64: 1, 256>}, {transform_indices = @transform_3, window_bounds = array<i64: 16, 256>}]} {
    %c0 = arith.constant 0 : index
    %c0_0 = arith.constant 0 : index
    %0 = vector.load %arg1[%c0, %c0_0] : memref<16x32xbf16, #tpu.memory_space<vmem>>, vector<16x32xbf16>
    %1 = arith.extf %0 : vector<16x32xbf16> to vector<16x32xf32>
    %c15_i32 = arith.constant 15 : i32
    %2 = tpu.dynamic_rotate %1 by %c15_i32 dim 0 : vector<16x32xf32>, i32 -> vector<16x32xf32>
    %3 = arith.truncf %2 : vector<16x32xf32> to vector<16x32xbf16>
    %c14_i32 = arith.constant 14 : i32
    %4 = tpu.dynamic_rotate %1 by %c14_i32 dim 0 : vector<16x32xf32>, i32 -> vector<16x32xf32>
    %5 = arith.truncf %4 : vector<16x32xf32> to vector<16x32xbf16>
    %c0_1 = arith.constant 0 : index
    %c0_2 = arith.constant 0 : index
    %c0_3 = arith.constant 0 : index
    %6 = vector.load %arg2[%c0_1, %c0_2, %c0_3] : memref<3x32x256xbf16, #tpu.memory_space<vmem>>, vector<1x32x256xbf16>
    %7 = vector.shape_cast %6 : vector<1x32x256xbf16> to vector<32x256xbf16>
    %cst = arith.constant dense<0.000000e+00> : vector<16x256xf32>
    %8 = tpu.matmul %0, %7, %cst {dimension_numbers = #tpu.dot_dimension_numbers<[1], [0], [0], [1], [0, 0, 1, 1], [], []>} : vector<16x32xbf16>, vector<32x256xbf16>, vector<16x256xf32> -> vector<16x256xf32>
    %c1 = arith.constant 1 : index
    %c0_4 = arith.constant 0 : index
    %c0_5 = arith.constant 0 : index
    %9 = vector.load %arg2[%c1, %c0_4, %c0_5] : memref<3x32x256xbf16, #tpu.memory_space<vmem>>, vector<1x32x256xbf16>
    %10 = vector.shape_cast %9 : vector<1x32x256xbf16> to vector<32x256xbf16>
    %cst_6 = arith.constant dense<0.000000e+00> : vector<16x256xf32>
    %11 = tpu.matmul %3, %10, %cst_6 {dimension_numbers = #tpu.dot_dimension_numbers<[1], [0], [0], [1], [0, 0, 1, 1], [], []>} : vector<16x32xbf16>, vector<32x256xbf16>, vector<16x256xf32> -> vector<16x256xf32>
    %12 = arith.addf %8, %11 : vector<16x256xf32>
    %c2 = arith.constant 2 : index
    %c0_7 = arith.constant 0 : index
    %c0_8 = arith.constant 0 : index
    %13 = vector.load %arg2[%c2, %c0_7, %c0_8] : memref<3x32x256xbf16, #tpu.memory_space<vmem>>, vector<1x32x256xbf16>
    %14 = vector.shape_cast %13 : vector<1x32x256xbf16> to vector<32x256xbf16>
    %cst_9 = arith.constant dense<0.000000e+00> : vector<16x256xf32>
    %15 = tpu.matmul %5, %14, %cst_9 {dimension_numbers = #tpu.dot_dimension_numbers<[1], [0], [0], [1], [0, 0, 1, 1], [], []>} : vector<16x32xbf16>, vector<32x256xbf16>, vector<16x256xf32> -> vector<16x256xf32>
    %16 = arith.addf %12, %15 : vector<16x256xf32>
    %c0_10 = arith.constant 0 : index
    %c0_11 = arith.constant 0 : index
    %17 = vector.load %arg3[%c0_10, %c0_11] : memref<1x256xf32, #tpu.memory_space<vmem>>, vector<1x256xf32>
    %18 = vector.broadcast %17 : vector<1x256xf32> to vector<16x256xf32>
    %19 = arith.addf %16, %18 : vector<16x256xf32>
    %cst_12 = arith.constant 0.000000e+00 : f32
    %20 = vector.broadcast %cst_12 : f32 to vector<16x256xf32>
    %21 = arith.maximumf %19, %20 : vector<16x256xf32>
    %c0_13 = arith.constant 0 : index
    %c0_14 = arith.constant 0 : index
    %22 = vector.load %arg4[%c0_13, %c0_14] : memref<16x256xf32, #tpu.memory_space<vmem>>, vector<16x256xf32>
    tpu.vector_store %arg4[%c0_13, %c0_14], %21 {strides = array<i32>} : memref<16x256xf32, #tpu.memory_space<vmem>>, vector<16x256xf32>,
    return
  }
  func.func @transform_0(%arg0: i32) -> (i32, i32) {
    %c0_i32 = arith.constant 0 : i32
    %c0_i32_0 = arith.constant 0 : i32
    return %arg0, %c0_i32 : i32, i32
  }
  func.func @transform_1(%arg0: i32) -> (i32, i32, i32) {
    %c0_i32 = arith.constant 0 : i32
    %c0_i32_0 = arith.constant 0 : i32
    %c0_i32_1 = arith.constant 0 : i32
    %c0_i32_2 = arith.constant 0 : i32
    return %c0_i32, %c0_i32_0, %c0_i32_1 : i32, i32, i32
  }
  func.func @transform_2(%arg0: i32) -> (i32, i32) {
    %c0_i32 = arith.constant 0 : i32
    %c0_i32_0 = arith.constant 0 : i32
    %c0_i32_1 = arith.constant 0 : i32
    return %c0_i32, %c0_i32_0 : i32, i32
  }
  func.func @transform_3(%arg0: i32) -> (i32, i32) {
    %c0_i32 = arith.constant 0 : i32
    %c0_i32_0 = arith.constant 0 : i32
    return %arg0, %c0_i32 : i32, i32
  }
}

</mosaic_0001>

<bundles_post_ra>
// kernel: tpu_custom_call.1
= control target key start
LH: loop header
LB: loop body
LE: loop exit
PB: predicated region body
PF: predicated region fallthrough
CT: control target
= control target key end

     0   :  { %8 = vsyncpa [#allocation3], 0  ;;  %s524_s0 = inlined_call_operand.hbm [shape: bf16[16,32], index: 0, kind: input, shape index: {}]   ;;  %s525_s1 = inlined_call_operand.hbm [shape: bf16[3,32,256], index: 1, kind: input, shape index: {}]   ;;  %s526_s2 = inlined_call_operand.vmem [shape: f32[1,256], index: 2, kind: input, shape index: {}]   ;;  %s527_s3 = inlined_call_operand.hbm [shape: f32[16,256], index: 3, kind: output, shape index: {}]  }
   0x1   :  { %9 = vsyncpa [#allocation6], 0 }
   0x2   :  { %10 = vsyncpa [#allocation4], 0  ;;  %s452_s12 = smov [#allocation2]   ;;  %s380_s16 = scalar_lea.hbm %s524_s0, 128 }
   0x3   :  { %s16_s13 = sshll.u32 %s452_s12, 4  ;;  %p381_p0 = scmp.ne.s32.totalorder %s524_s0, %s380_s16  ;;  %s17_s13 = int_to_ptr.vmem [resolvable:$true] %s16_s13 }
   0x4   :  { %p384_p1 = scmp.lt.u32.totalorder %s380_s16, %s524_s0 }
   0x6   :  { %p386_p2 = pnand %p384_p1, %p381_p0 }
   0x8   :  { %389 = shalt.err (!%p386_p2)
}
   0x9   :  { %s390_s21 = scalar_lea.vmem %s17_s13, 128  ;;  %p395_p4 = scmp.lt.s32.totalorder %s17_s13, %s17_s13 }
   0xa   :  { %p391_p3 = scmp.ne.s32.totalorder %s17_s13, %s390_s21  ;;  %p396_p5 = scmp.lt.s32.totalorder %s390_s21, %s390_s21 }
   0xc   :  { %p397_p6 = por %p396_p5, %p395_p4 }
   0xe   :  { %p398_p7 = pnand %p397_p6, %p391_p3 }
  0x10   :  { %401 = shalt.err (!%p398_p7)
}
  0x11   :  { %s453_s22 = smov 64   ;;  %s454_s23 = smov 4  }
  0x12   :  { %22 = dma.hbm_to_vmem [thread:$0]  %s524_s0, 128, %s17_s13, [#allocation3], %s453_s22, %s453_s22, %s454_s23  }
  0x13   :  { %s455_s26 = smov [#allocation5]   ;;  %s402_s30 = scalar_lea.hbm %s525_s1, 1536 }
  0x14   :  { %s28_s27 = sshll.u32 %s455_s26, 4  ;;  %p403_p8 = scmp.ne.s32.totalorder %s525_s1, %s402_s30  ;;  %s29_s27 = int_to_ptr.vmem [resolvable:$true] %s28_s27 }
  0x15   :  { %p406_p9 = scmp.lt.u32.totalorder %s402_s30, %s525_s1 }
  0x17   :  { %p408_p10 = pnand %p406_p9, %p403_p8 }
  0x19   :  { %411 = shalt.err (!%p408_p10)
}
  0x1a   :  { %s412_s8 = scalar_lea.vmem %s29_s27, 1536  ;;  %p417_p12 = scmp.lt.s32.totalorder %s29_s27, %s29_s27 }
  0x1b   :  { %p413_p11 = scmp.ne.s32.totalorder %s29_s27, %s412_s8  ;;  %p418_p13 = scmp.lt.s32.totalorder %s412_s8, %s412_s8 }
  0x1d   :  { %p419_p0 = por %p418_p13, %p417_p12 }
  0x1f   :  { %p420_p1 = pnand %p419_p0, %p413_p11 }
  0x21   :  { %423 = shalt.err (!%p420_p1)
}
  0x22   :  { %s456_s0 = smov 128   ;;  %s457_s9 = smov 8  }
  0x23   :  { %34 = dma.hbm_to_vmem [thread:$0]  %s525_s1, 1536, %s29_s27, [#allocation6], %s456_s0, %s456_s0, %s457_s9  }
  0x24   :  { %446 = dma.done.wait [#allocation3], 128  }
  0x25   :  { %447 = vsyncadd [#allocation3], 4294967168 }
  0x26   :  { %448 = dma.done.wait [#allocation6], 1536  }
  0x27   :  { %449 = vsyncadd [#allocation6], 4294965760  ;;  %v458_v0 = vmov 0   ;;  %v50_v1 = vlaneseq  ;;  %v360_v2 = vld [vmem:[#allocation5 + $0x4] ss:$8 sps:$4 sm:$0xff]   ;;  %v44_v6 = vld [vmem:[#allocation2] sm:$0xff]  }
  0x28   :  { %198 = vmatprep.mubr.bf16.mxu0 %v458_v0  ;;  %127 = vmatprep.mubr.bf16.mxu1 %v458_v0  ;;  %v362_v4 = vld [vmem:[#allocation5] ss:$8 sps:$4 sm:$0xff]   ;;  %v363_v5 = vld [vmem:[#allocation5 + $0x14] ss:$8 sps:$4 sm:$0xff]   ;;  %v365_v7 = vld [vmem:[#allocation5 + $0x10] ss:$8 sps:$4 sm:$0xff]   ;;  %v46_v8 = vunpack.c.l.bf16 %v44_v6  ;;  %v47_v9 = vunpack.c.h.bf16 %v44_v6 }
  0x29   :  { %v51_v3 = vshrl.u32 %v50_v1, 7  ;;  %166 = vmatprep.subr.bf16.mxu0 %v360_v2  ;;  %v369_v10 = vld [vmem:[#allocation5 + $0x44] ss:$8 sps:$4 sm:$0xff]   ;;  %v367_v13 = vld [vmem:[#allocation5 + $0x40] ss:$8 sps:$4 sm:$0xff]   ;;  %vm91_vm1 = vcmask 261120  }
  0x2a   :  { %167 = vmatpush1.bf16.msra.mxu0 %v362_v4  ;;  %v48_v11 = vrot.slane %v46_v8, 1  ;;  %v49_v12 = vrot.slane %v47_v9, 1  ;;  %v370_v14 = vld [vmem:[#allocation5 + $0x24] ss:$8 sps:$4 sm:$0xff]   ;;  %v372_v15 = vld [vmem:[#allocation5 + $0x20] ss:$8 sps:$4 sm:$0xff]  }
  0x2b   :  { %168 = vmatprep.subr.bf16.mxu0 %v363_v5  ;;  %vm52_vm0 = vcmp.lt.s32.totalorder %v51_v3, 7  ;;  %95 = vmatprep.subr.bf16.mxu1 %v370_v14  ;;  %v373_v16 = vld [vmem:[#allocation5 + $0x34] ss:$8 sps:$4 sm:$0xff]   ;;  %v378_v18 = vld [vmem:[#allocation5 + $0x30] ss:$8 sps:$4 sm:$0xff]   ;;  %v56_v21 = vrot.slane %v46_v8, 2 }
  0x2c   :  { %96 = vmatpush1.bf16.msra.mxu1 %v372_v15  ;;  %v377_v17 = vld [vmem:[#allocation5 + $0x54] ss:$8 sps:$4 sm:$0xff]   ;;  %v53_v19 = vsel %vm52_vm0, %v48_v11, %v49_v12  ;;  %v54_v20 = vsel %vm52_vm0, %v49_v12, %v48_v11  ;;  %v57_v22 = vrot.slane %v47_v9, 2  ;;  %v375_v23 = vld [vmem:[#allocation5 + $0x50] ss:$8 sps:$4 sm:$0xff]   ;;  %vm58_vm2 = vcmp.lt.s32.totalorder %v51_v3, 6 }
  0x2d   :  { %97 = vmatprep.subr.bf16.mxu1 %v373_v16  ;;  %v55_v24 = vpack.c.bf16 %v54_v20, %v53_v19  ;;  %v288_v31 = vsub.s32 0, %v51_v3  ;;  %v284_v32 = vld [vmem:[%s526_s2] sm:$0x3]  ;;  %v292_v34 = vsub.s32 1, %v51_v3  ;;  %s459_s13 = smov [#allocation7]  }
  0x2e   :  { %169 = vmatpush1.bf16.msra.mxu0 %v365_v7  ;;  %v59_v25 = vsel %vm58_vm2, %v56_v21, %v57_v22  ;;  %v60_v26 = vsel %vm58_vm2, %v57_v22, %v56_v21  ;;  %s313_s14 = sshll.u32 %s459_s13, 4  ;;  %s314_s14 = int_to_ptr.vmem [resolvable:$true] %s313_s14 }
  0x2f   :  { %237 = vmatprep.subr.bf16.mxu0 %v369_v10  ;;  %v61_v27 = vpack.c.bf16 %v60_v26, %v59_v25  ;;  %v289_v35 = vrot.slane %v284_v32, %v288_v31  ;;  %v293_v37 = vrot.slane %v284_v32, %v292_v34  ;;  %s424_s2 = scalar_lea.vmem %s314_s14, 512  ;;  %p429_p3 = scmp.lt.s32.totalorder %s314_s14, %s314_s14 }
  0x30   :  { %98 = vmatpush1.bf16.msra.mxu1 %v378_v18  ;;  %p425_p2 = scmp.ne.s32.totalorder %s314_s14, %s424_s2  ;;  %p430_p4 = scmp.lt.s32.totalorder %s424_s2, %s424_s2 }
  0x31   :  { %336 = vmatmul.mubr.msk.bf16.vlgmr.msra.gmra.mrb[0].mxu0 %vm91_vm1, %v44_v6 }
  0x32   :  { %238 = vmatpush1.bf16.msra.mxu0 %v367_v13  ;;  %269 = vmatprep.mubr.bf16.mxu0 %v458_v0  ;;  %p431_p5 = por %p430_p4, %p429_p3 }
  0x33   :  { %239 = vmatprep.subr.bf16.mxu0 %v377_v17  ;;  %330 = vmatmul.mubr.msk.bf16.vlgmr.msra.gmra.mrb[0].mxu1 %vm91_vm1, %v55_v24 }
  0x34   :  { %p432_p6 = pnand %p431_p5, %p425_p2 }
  0x36   :  { %240 = vmatpush1.bf16.msra.mxu0 %v375_v23 }
  0x3d   :  { %341 = vmatmul.mubr.msk.bf16.vlgmr.msra.gmra.mrb[0].mxu0 %vm91_vm1, %v61_v27 }
 0x106   :  { %v129_v28 = vpop.f32.mrb[0].mxu1 }
 0x107   :  { %v131_v29 = vpop.f32.mrb[1].mxu1 }
 0x108   :  { %v133_v30 = vpop.f32.mrb[2].mxu1 }
 0x109   :  { %v135_v33 = vpop.f32.mrb[3].mxu1 }
 0x110   :  { %v271_v36 = vpop.f32.mrb[0].mxu0 }
 0x111   :  { %v342_v38 = vadd.f32 %v271_v36, %v129_v28  ;;  %v273_v39 = vpop.f32.mrb[1].mxu0 }
 0x112   :  { %v343_v40 = vadd.f32 %v273_v39, %v131_v29  ;;  %v275_v41 = vpop.f32.mrb[2].mxu0 }
 0x113   :  { %v296_v42 = vadd.f32 %v342_v38, %v289_v35  ;;  %v344_v43 = vadd.f32 %v275_v41, %v133_v30  ;;  %v277_v44 = vpop.f32.mrb[3].mxu0 }
 0x114   :  { %v297_v45 = vadd.f32 %v343_v40, %v293_v37  ;;  %v345_v46 = vadd.f32 %v277_v44, %v135_v33 }
 0x115   :  { %v300_v47 = vmax.f32 %v296_v42, 0.0  ;;  %v298_v48 = vadd.f32 %v344_v43, %v289_v35 }
 0x116   :  { %v301_v49 = vmax.f32 %v297_v45, 0.0  ;;  %v299_v50 = vadd.f32 %v345_v46, %v293_v37 }
 0x117   :  { %304 = vst [vmem:[#allocation7] sm:$0xff] %v300_v47  ;;  %v302_v51 = vmax.f32 %v298_v48, 0.0 }
 0x118   :  { %305 = vst [vmem:[#allocation7 + $0x8] sm:$0xff] %v301_v49  ;;  %v303_v52 = vmax.f32 %v299_v50, 0.0 }
 0x119   :  { %306 = vst [vmem:[#allocation7 + $0x10] sm:$0xff] %v302_v51 }
 0x11a   :  { %307 = vst [vmem:[#allocation7 + $0x18] sm:$0xff] %v303_v52 }
 0x11b   :  { %435 = shalt.err (!%p432_p6)
}
 0x11c   :  { %s436_s17 = scalar_lea.hbm %s527_s3, 512 }
 0x11d   :  { %p437_p7 = scmp.ne.s32.totalorder %s527_s3, %s436_s17  ;;  %p440_p8 = scmp.lt.u32.totalorder %s436_s17, %s527_s3 }
 0x11f   :  { %p442_p9 = pnand %p440_p8, %p437_p7 }
 0x121   :  { %445 = shalt.err (!%p442_p9)
}
 0x122   :  { %s460_s22 = smov 256   ;;  %s461_s23 = smov 16  }
 0x123   :  { %319 = dma.vmem_to_hbm [thread:$0]  %s314_s14, 512, %s527_s3, [#allocation4], %s460_s22, %s460_s22, %s461_s23  }
 0x124   :  { %450 = dma.done.wait [#allocation4], 512  }
 0x125   :  { %451 = vsyncadd [#allocation4], 4294966784 }
 0x126   :  { %323 = vsyncpa [#allocation3], 1 }
 0x127   :  { %324 = vsyncpa [#allocation6], 1 }
 0x128   :  { %325 = vsyncpa [#allocation4], 1 }

</bundles_post_ra>
